<compile_context>
chip_gen: v7x
topology: tpu7x:2x2x1
jax: 0.10.0
libtpu: 0.0.40
codegen_flags: <defaults>
</compile_context>

<pallas_src>
import jax
import jax.numpy as jnp
from jax.experimental import pallas as pl
from jax.experimental.pallas import tpu as pltpu

# ----------------------------- model config -----------------------------
CONT_FIELD = 2
CATE_FIELD = 3
COMB_FIELD = 3
CATE_CONT_FEATURE = 20          # vocab for orig / addition embedding tables
COMB_FEATURE = 15               # vocab for comb embedding table
ORIG_DIM = 32
COMB_DIM = 8
HIDDEN_DIMS = [32, 32]
SELECTED_PAIRS = ((0, 1), (0, 2), (1, 2))   # len == COMB_FIELD
BATCH = 8

FIRST_LAYER = ORIG_DIM * (CATE_FIELD + CONT_FIELD) + COMB_FIELD * COMB_DIM  # 184
LN_EPS = 1e-5


def _round_up(x, m):
    return ((x + m - 1) // m) * m


CATE_VOCAB_PAD = _round_up(CATE_CONT_FEATURE, 8)       # 24
COMB_VOCAB_PAD = _round_up(COMB_FEATURE, 8)            # 16
CATE_ROWS = CATE_FIELD * CATE_VOCAB_PAD                # 72  (cate one-hot rows)
COMB_ROWS = COMB_FIELD * COMB_VOCAB_PAD                # 48  (comb one-hot rows)
ADD_ROWS = CATE_FIELD * COMB_DIM                       # 24  (addition embeddings)
AUX_ROWS = 8                                           # conts(2) + ones(1) + pad(5)
OUT_ROWS = 8                                           # 8-sublane-aligned output block
N_IDX = CATE_FIELD + COMB_FIELD                        # 6 packed index rows

TILE_LANES = 128                # lane granularity of the batch tile
TILE_CAP = 1024                 # max batch rows per grid step  [R3]


# ------------------------------ Pallas kernel ----------------------------
def _layer_norm_cols(h, gamma, beta):
    """LayerNorm over the hidden (sublane) axis of a (H, tb) tile (two-pass)."""
    mu = jnp.mean(h, axis=0, keepdims=True)
    d = h - mu
    var = jnp.mean(d * d, axis=0, keepdims=True)
    return d * jax.lax.rsqrt(var + LN_EPS) * gamma + beta


def fused_kernel(idx_ref, aux_ref, m1_ref, m2_ref, w2t_ref, vecs_ref, o_ref):
    """Transposed forward pass: hidden dim on sublanes, batch on lanes."""
    f32 = jnp.float32
    tb = idx_ref.shape[1]
    h1 = HIDDEN_DIMS[0]

    idx = idx_ref[...]                                           # (6, tb) int32

    # ---- one-hots (indices pre-shifted into disjoint row bands) [R6] ----
    iota_c = jax.lax.broadcasted_iota(jnp.int32, (CATE_ROWS, tb), 0)
    oh_cate = jnp.zeros((CATE_ROWS, tb), f32)
    for f in range(CATE_FIELD):
        oh_cate = oh_cate + (iota_c == idx[f:f + 1, :]).astype(f32)

    iota_b = jax.lax.broadcasted_iota(jnp.int32, (COMB_ROWS, tb), 0)
    oh_comb = jnp.zeros((COMB_ROWS, tb), f32)
    for m in range(COMB_FIELD):
        oh_comb = oh_comb + (iota_b == idx[CATE_FIELD + m:CATE_FIELD + m + 1, :]).astype(f32)

    # ---- layer 1, push A: folded cate tables + cont + b1, and the
    #      block-diagonal addition-embedding gather, in one matmul [R1] ----
    feats1 = jnp.concatenate([oh_cate, aux_ref[...]], axis=0)    # (80, tb)
    big = jnp.dot(m1_ref[...], feats1, preferred_element_type=f32)  # (56, tb)
    h = big[0:h1, :]                                             # cate+cont+b1 contribution
    add_all = big[h1:, :]                                        # (24, tb) addition embeddings

    # ---- layer 1, push B: comb-table blend + cartesian pair products
    #      (alpha softmax weights folded into m2 in the wrapper) [R1][R7] ----
    pair_blocks = [add_all[COMB_DIM * i:COMB_DIM * (i + 1), :]
                   * add_all[COMB_DIM * j:COMB_DIM * (j + 1), :]
                   for (i, j) in SELECTED_PAIRS]                 # 3 x (8, tb)
    feats2 = jnp.concatenate([oh_comb] + pair_blocks, axis=0)    # (72, tb)
    h = h + jnp.dot(m2_ref[...], feats2, preferred_element_type=f32)

    # ---- LN + ReLU ----
    h = jnp.maximum(_layer_norm_cols(h, vecs_ref[:, 0:1], vecs_ref[:, 1:2]), 0.0)

    # ---- layer 2 + LN + ReLU ----
    h = jnp.dot(w2t_ref[...], h, preferred_element_type=f32) + vecs_ref[:, 2:3]
    h = jnp.maximum(_layer_norm_cols(h, vecs_ref[:, 3:4], vecs_ref[:, 4:5]), 0.0)

    # ---- output layer: wo . h + bo via VPU mul + sublane reduce (no MXU push),
    #      sigmoid on a single lane-dense (1, tb) row [R2] ----
    logit = jnp.sum(h * vecs_ref[:, 5:6], axis=0, keepdims=True) + vecs_ref[0:1, 6:7]
    o_ref[...] = jnp.broadcast_to(jax.nn.sigmoid(logit), o_ref.shape)


# ------------------------------ wrapper -----------------------------------
def forward_pallas(packed, conts, cates, combs, alpha):
    b = conts.shape[0]

    # [R3][R4][R8] batch tiling: as few 128-aligned steps as possible,
    # but >=2 parallel steps for mid/large batches (both v7x TensorCores).
    b_lane = _round_up(max(b, 1), TILE_LANES)
    num_steps = -(-b_lane // TILE_CAP)
    if b_lane >= 2 * TILE_LANES:
        num_steps = max(num_steps, 2)
    tb = _round_up(-(-b_lane // num_steps), TILE_LANES)
    num_steps = -(-b_lane // tb)
    b_pad = num_steps * tb

    # [R7][R1] alpha softmax + folding of the blend weights into the per-call
    # comb/pair weight matrix; the kernel never sees alpha.  The null-embedding
    # term (weight na[:, 2]) is identically zero and is dropped.
    na = jax.nn.softmax(alpha.astype(jnp.float32), axis=1)           # (COMB_FIELD, 3)
    scale_comb = jnp.repeat(na[:, 0], COMB_VOCAB_PAD)                # (48,)
    scale_pair = jnp.repeat(na[:, 1], COMB_DIM)                      # (24,)
    m2 = jnp.concatenate([packed["folded_comb_T"] * scale_comb[None, :],
                          packed["w1_pair_T"] * scale_pair[None, :]], axis=1)   # (32, 72)

    # [R5] pack & transpose inputs: batch on lanes, indices pre-shifted into
    # their one-hot row band; conts + a ones-row (carries b1) + zero padding.
    cates_sh = cates.astype(jnp.int32) + (
        jnp.arange(CATE_FIELD, dtype=jnp.int32) * CATE_VOCAB_PAD)[None, :]
    combs_sh = combs.astype(jnp.int32) + (
        jnp.arange(COMB_FIELD, dtype=jnp.int32) * COMB_VOCAB_PAD)[None, :]
    idx = jnp.concatenate([cates_sh, combs_sh], axis=1).T            # (6, b)
    idx = jnp.pad(idx, ((0, 0), (0, b_pad - b)))

    aux = jnp.concatenate([conts.astype(jnp.float32).T,
                           jnp.ones((1, b), jnp.float32),
                           jnp.zeros((AUX_ROWS - CONT_FIELD - 1, b), jnp.float32)],
                          axis=0)
    aux = jnp.pad(aux, ((0, 0), (0, b_pad - b)))                     # (8, b_pad)

    def resident(arr):
        # Constant index_map -> block stays resident in VMEM across grid steps.
        return pl.BlockSpec(arr.shape, lambda i: (0, 0))

    out = pl.pallas_call(
        fused_kernel,
        out_shape=jax.ShapeDtypeStruct((num_steps * OUT_ROWS, tb), jnp.float32),
        grid=(num_steps,),
        in_specs=[
            pl.BlockSpec((N_IDX, tb), lambda i: (0, i)),
            pl.BlockSpec((AUX_ROWS, tb), lambda i: (0, i)),
            resident(packed["m1"]),
            resident(m2),
            resident(packed["w2_T"]),
            resident(packed["vecs"]),
        ],
        out_specs=pl.BlockSpec((OUT_ROWS, tb), lambda i: (i, 0)),
        compiler_params=pltpu.CompilerParams(
            dimension_semantics=("parallel",)),
    )(idx, aux, packed["m1"], m2, packed["w2_T"], packed["vecs"])

    # row 0 of every (8, tb) block holds the tb logits of that grid step
    logits = out.reshape(num_steps, OUT_ROWS, tb)[:, 0, :].reshape(-1)[:b]
    return logits[:, None]


forward = jax.jit(forward_pallas)


# --------------------------- parameter init ------------------------------
def init_params(key):
    ks = jax.random.split(key, 8)

    def linear(k, fan_in, fan_out):
        kw, kb = jax.random.split(k)
        bound = 1.0 / jnp.sqrt(jnp.float32(fan_in))
        w = jax.random.uniform(kw, (fan_in, fan_out), jnp.float32, -bound, bound)
        b = jax.random.uniform(kb, (1, fan_out), jnp.float32, -bound, bound)
        return w, b

    params = {}
    params["orig_emb"] = jax.random.normal(ks[0], (CATE_CONT_FEATURE, ORIG_DIM), jnp.float32)
    params["comb_emb"] = jax.random.normal(ks[1], (COMB_FEATURE, COMB_DIM), jnp.float32)
    params["add_emb"] = jax.random.normal(ks[2], (CATE_CONT_FEATURE, COMB_DIM), jnp.float32)

    params["w1"], params["b1"] = linear(ks[3], FIRST_LAYER, HIDDEN_DIMS[0])
    params["w2"], params["b2"] = linear(ks[4], HIDDEN_DIMS[0], HIDDEN_DIMS[1])
    params["wo"], params["bo"] = linear(ks[5], HIDDEN_DIMS[1], 1)

    # LayerNorm affine params (PyTorch default: gamma=1, beta=0)
    params["g1"] = jnp.ones((1, HIDDEN_DIMS[0]), jnp.float32)
    params["be1"] = jnp.zeros((1, HIDDEN_DIMS[0]), jnp.float32)
    params["g2"] = jnp.ones((1, HIDDEN_DIMS[1]), jnp.float32)
    params["be2"] = jnp.zeros((1, HIDDEN_DIMS[1]), jnp.float32)
    return params


def pack_params(params):
    """One-time host-side packing: fold embedding tables into w1 [R1]."""
    hp = jax.lax.Precision.HIGHEST
    h1 = HIDDEN_DIMS[0]
    w1 = params["w1"]                                              # (184, 32)

    orig_pad = jnp.pad(params["orig_emb"],
                       ((0, CATE_VOCAB_PAD - CATE_CONT_FEATURE), (0, 0)))   # (24, 32)
    addt_pad = jnp.pad(params["add_emb"],
                       ((0, CATE_VOCAB_PAD - CATE_CONT_FEATURE), (0, 0)))   # (24, 8)
    combt_pad = jnp.pad(params["comb_emb"],
                        ((0, COMB_VOCAB_PAD - COMB_FEATURE), (0, 0)))       # (16, 8)

    # fold the orig-embedding table into the categorical row-blocks of w1
    folded_cate_T = jnp.concatenate(
        [jnp.dot(orig_pad,
                 w1[(CONT_FIELD + f) * ORIG_DIM:(CONT_FIELD + f + 1) * ORIG_DIM, :],
                 precision=hp).T
         for f in range(CATE_FIELD)], axis=1)                      # (32, 72)

    # continuous fields collapse to a (32, CONT_FIELD) matrix
    cont_fold_T = jnp.stack(
        [jnp.dot(params["orig_emb"][f], w1[f * ORIG_DIM:(f + 1) * ORIG_DIM, :],
                 precision=hp)
         for f in range(CONT_FIELD)], axis=1)                      # (32, 2)

    # block-diagonal gather matrix for the addition-embedding table
    add_bd = jnp.zeros((CATE_ROWS, ADD_ROWS), jnp.float32)
    for f in range(CATE_FIELD):
        add_bd = add_bd.at[f * CATE_VOCAB_PAD:(f + 1) * CATE_VOCAB_PAD,
                           f * COMB_DIM:(f + 1) * COMB_DIM].set(addt_pad)
    add_bd_T = add_bd.T                                            # (24, 72)

    # M1: rows 0:32  -> cate + cont + b1 contribution to layer 1
    #     rows 32:56 -> addition embeddings (for the pair products)
    top = jnp.concatenate(
        [folded_cate_T, cont_fold_T, params["b1"].reshape(h1, 1),
         jnp.zeros((h1, AUX_ROWS - CONT_FIELD - 1), jnp.float32)], axis=1)   # (32, 80)
    bot = jnp.concatenate(
        [add_bd_T, jnp.zeros((ADD_ROWS, AUX_ROWS), jnp.float32)], axis=1)    # (24, 80)
    m1 = jnp.concatenate([top, bot], axis=0)                       # (56, 80)

    # comb-table fold and raw pair weights (alpha scales applied per call)
    base = (CONT_FIELD + CATE_FIELD) * ORIG_DIM
    folded_comb_T = jnp.concatenate(
        [jnp.dot(combt_pad, w1[base + m * COMB_DIM:base + (m + 1) * COMB_DIM, :],
                 precision=hp).T
         for m in range(COMB_FIELD)], axis=1)                      # (32, 48)
    w1_pair_T = w1[base:base + COMB_FIELD * COMB_DIM, :].T         # (32, 24)

    # per-layer vectors packed as columns of one (32, 8) block:
    #   0=g1 1=be1 2=b2 3=g2 4=be2 5=wo 6=bo 7=pad
    bo_col = jnp.full((h1,), params["bo"].reshape(()), jnp.float32)
    vecs = jnp.stack([params["g1"].reshape(-1), params["be1"].reshape(-1),
                      params["b2"].reshape(-1), params["g2"].reshape(-1),
                      params["be2"].reshape(-1), params["wo"].reshape(-1),
                      bo_col, jnp.zeros((h1,), jnp.float32)], axis=1)        # (32, 8)

    return {"m1": m1, "folded_comb_T": folded_comb_T, "w1_pair_T": w1_pair_T,
            "w2_T": params["w2"].T, "vecs": vecs}


# --------------------------- pure-JAX reference ---------------------------
def build_X(params, conts, cates, combs, alpha):
    b = conts.shape[0]
    cont_idx = jnp.arange(CONT_FIELD)
    cont_emb = params["orig_emb"][cont_idx]
    cont_emb = jnp.broadcast_to(cont_emb[None], (b, CONT_FIELD, ORIG_DIM))
    cont_emb = cont_emb * conts[:, :, None]

    cate_emb = params["orig_emb"][cates]
    comb_emb = params["comb_emb"][combs]
    add_emb = params["add_emb"][cates]

    pair_emb = jnp.stack(
        [add_emb[:, i] * add_emb[:, j] for (i, j) in SELECTED_PAIRS], axis=1)

    a = jax.nn.softmax(alpha, axis=1)
    final_comb = comb_emb * a[None, :, 0:1] + pair_emb * a[None, :, 1:2]

    return jnp.concatenate(
        [cont_emb.reshape(b, -1), cate_emb.reshape(b, -1), final_comb.reshape(b, -1)],
        axis=1).astype(jnp.float32)


def forward_ref(params, conts, cates, combs, alpha):
    X = build_X(params, conts, cates, combs, alpha)
    hp = jax.lax.Precision.HIGHEST

    def ln(h, g, be):
        mu = jnp.mean(h, axis=-1, keepdims=True)
        var = jnp.mean((h - mu) ** 2, axis=-1, keepdims=True)
        return (h - mu) * jax.lax.rsqrt(var + LN_EPS) * g + be

    h = jnp.maximum(ln(jnp.dot(X, params["w1"], precision=hp) + params["b1"],
                       params["g1"], params["be1"]), 0.0)
    h = jnp.maximum(ln(jnp.dot(h, params["w2"], precision=hp) + params["b2"],
                       params["g2"], params["be2"]), 0.0)
    return jax.nn.sigmoid(jnp.dot(h, params["wo"], precision=hp) + params["bo"])


# ------------------------------- main -------------------------------------
if __name__ == "__main__":
    key = jax.random.PRNGKey(0)
    k_param, k_conts, k_cates, k_combs, k_alpha = jax.random.split(key, 5)

    params = init_params(k_param)
    packed = pack_params(params)

    conts = jax.random.normal(k_conts, (BATCH, CONT_FIELD), jnp.float32)
    cates = jax.random.randint(k_cates, (BATCH, CATE_FIELD), 0, CATE_CONT_FEATURE)
    combs = jax.random.randint(k_combs, (BATCH, COMB_FIELD), 0, COMB_FEATURE)
    alpha = jax.random.normal(k_alpha, (COMB_FIELD, 3), jnp.float32)

    out = jax.block_until_ready(forward(packed, conts, cates, combs, alpha))
    ref = jax.block_until_ready(forward_ref(params, conts, cates, combs, alpha))

    assert out.shape == (BATCH, 1)
    err = float(jnp.max(jnp.abs(out - ref)))
    assert err < 2e-4, f"Pallas output mismatch vs JAX reference: {err}"

    print("KERNEL_OK")
</pallas_src>

<mosaic_0001>
module attributes {stable_mosaic.version = 11 : i64} {
  func.func @fused_kernel(%arg0: i32, %arg1: memref<6x128xi32, #tpu.memory_space<vmem>>, %arg2: memref<8x128xf32, #tpu.memory_space<vmem>>, %arg3: memref<56x80xf32, #tpu.memory_space<vmem>>, %arg4: memref<32x72xf32, #tpu.memory_space<vmem>>, %arg5: memref<32x32xf32, #tpu.memory_space<vmem>>, %arg6: memref<32x8xf32, #tpu.memory_space<vmem>>, %arg7: memref<8x128xf32, #tpu.memory_space<vmem>>) attributes {dimension_semantics = [#tpu.dimension_semantics<parallel>], iteration_bounds = array<i64: 1>, scalar_prefetch = 0 : i64, scratch_operands = 0 : i64, tpu.core_type = #tpu.core_type<tc>, window_params = [{transform_indices = @transform_0, window_bounds = array<i64: 6, 128>}, {transform_indices = @transform_1, window_bounds = array<i64: 8, 128>}, {pipeline_mode = #tpu.pipeline_mode<synchronous>, transform_indices = @transform_2, window_bounds = array<i64: 56, 80>}, {pipeline_mode = #tpu.pipeline_mode<synchronous>, transform_indices = @transform_3, window_bounds = array<i64: 32, 72>}, {pipeline_mode = #tpu.pipeline_mode<synchronous>, transform_indices = @transform_4, window_bounds = array<i64: 32, 32>}, {pipeline_mode = #tpu.pipeline_mode<synchronous>, transform_indices = @transform_5, window_bounds = array<i64: 32, 8>}, {transform_indices = @transform_6, window_bounds = array<i64: 8, 128>}]} {
    %c0 = arith.constant 0 : index
    %c0_0 = arith.constant 0 : index
    %0 = vector.load %arg1[%c0, %c0_0] : memref<6x128xi32, #tpu.memory_space<vmem>>, vector<6x128xi32>
    %1 = tpu.iota {dimensions = array<i32: 0>} : vector<72x128xi32>
    %cst = arith.constant 0.000000e+00 : f32
    %2 = vector.broadcast %cst : f32 to vector<72x128xf32>
    %3 = vector.extract_strided_slice %0 {offsets = [0, 0], sizes = [1, 128], strides = [1, 1]} : vector<6x128xi32> to vector<1x128xi32>
    %4 = vector.broadcast %3 : vector<1x128xi32> to vector<72x128xi32>
    %5 = arith.cmpi eq, %1, %4 : vector<72x128xi32>
    %6 = arith.extui %5 : vector<72x128xi1> to vector<72x128xi32>
    %7 = arith.sitofp %6 : vector<72x128xi32> to vector<72x128xf32>
    %8 = arith.addf %2, %7 : vector<72x128xf32>
    %9 = vector.extract_strided_slice %0 {offsets = [1, 0], sizes = [1, 128], strides = [1, 1]} : vector<6x128xi32> to vector<1x128xi32>
    %10 = vector.broadcast %9 : vector<1x128xi32> to vector<72x128xi32>
    %11 = arith.cmpi eq, %1, %10 : vector<72x128xi32>
    %12 = arith.extui %11 : vector<72x128xi1> to vector<72x128xi32>
    %13 = arith.sitofp %12 : vector<72x128xi32> to vector<72x128xf32>
    %14 = arith.addf %8, %13 : vector<72x128xf32>
    %15 = vector.extract_strided_slice %0 {offsets = [2, 0], sizes = [1, 128], strides = [1, 1]} : vector<6x128xi32> to vector<1x128xi32>
    %16 = vector.broadcast %15 : vector<1x128xi32> to vector<72x128xi32>
    %17 = arith.cmpi eq, %1, %16 : vector<72x128xi32>
    %18 = arith.extui %17 : vector<72x128xi1> to vector<72x128xi32>
    %19 = arith.sitofp %18 : vector<72x128xi32> to vector<72x128xf32>
    %20 = arith.addf %14, %19 : vector<72x128xf32>
    %21 = tpu.iota {dimensions = array<i32: 0>} : vector<48x128xi32>
    %cst_1 = arith.constant 0.000000e+00 : f32
    %22 = vector.broadcast %cst_1 : f32 to vector<48x128xf32>
    %23 = vector.extract_strided_slice %0 {offsets = [3, 0], sizes = [1, 128], strides = [1, 1]} : vector<6x128xi32> to vector<1x128xi32>
    %24 = vector.broadcast %23 : vector<1x128xi32> to vector<48x128xi32>
    %25 = arith.cmpi eq, %21, %24 : vector<48x128xi32>
    %26 = arith.extui %25 : vector<48x128xi1> to vector<48x128xi32>
    %27 = arith.sitofp %26 : vector<48x128xi32> to vector<48x128xf32>
    %28 = arith.addf %22, %27 : vector<48x128xf32>
    %29 = vector.extract_strided_slice %0 {offsets = [4, 0], sizes = [1, 128], strides = [1, 1]} : vector<6x128xi32> to vector<1x128xi32>
    %30 = vector.broadcast %29 : vector<1x128xi32> to vector<48x128xi32>
    %31 = arith.cmpi eq, %21, %30 : vector<48x128xi32>
    %32 = arith.extui %31 : vector<48x128xi1> to vector<48x128xi32>
    %33 = arith.sitofp %32 : vector<48x128xi32> to vector<48x128xf32>
    %34 = arith.addf %28, %33 : vector<48x128xf32>
    %35 = vector.extract_strided_slice %0 {offsets = [5, 0], sizes = [1, 128], strides = [1, 1]} : vector<6x128xi32> to vector<1x128xi32>
    %36 = vector.broadcast %35 : vector<1x128xi32> to vector<48x128xi32>
    %37 = arith.cmpi eq, %21, %36 : vector<48x128xi32>
    %38 = arith.extui %37 : vector<48x128xi1> to vector<48x128xi32>
    %39 = arith.sitofp %38 : vector<48x128xi32> to vector<48x128xf32>
    %40 = arith.addf %34, %39 : vector<48x128xf32>
    %c0_2 = arith.constant 0 : index
    %c0_3 = arith.constant 0 : index
    %41 = vector.load %arg2[%c0_2, %c0_3] : memref<8x128xf32, #tpu.memory_space<vmem>>, vector<8x128xf32>
    %42 = tpu.concatenate %20, %41 in 0 : vector<72x128xf32>, vector<8x128xf32> -> vector<80x128xf32>
    %c0_4 = arith.constant 0 : index
    %c0_5 = arith.constant 0 : index
    %43 = vector.load %arg3[%c0_4, %c0_5] : memref<56x80xf32, #tpu.memory_space<vmem>>, vector<56x80xf32>
    %cst_6 = arith.constant dense<0.000000e+00> : vector<56x128xf32>
    %44 = tpu.matmul %43, %42, %cst_6 {dimension_numbers = #tpu.dot_dimension_numbers<[1], [0], [0], [1], [0, 0, 1, 1], [], []>} : vector<56x80xf32>, vector<80x128xf32>, vector<56x128xf32> -> vector<56x128xf32>
    %45 = vector.extract_strided_slice %44 {offsets = [0, 0], sizes = [32, 128], strides = [1, 1]} : vector<56x128xf32> to vector<32x128xf32>
    %46 = vector.extract_strided_slice %44 {offsets = [32, 0], sizes = [24, 128], strides = [1, 1]} : vector<56x128xf32> to vector<24x128xf32>
    %47 = vector.extract_strided_slice %46 {offsets = [0, 0], sizes = [8, 128], strides = [1, 1]} : vector<24x128xf32> to vector<8x128xf32>
    %48 = vector.extract_strided_slice %46 {offsets = [8, 0], sizes = [8, 128], strides = [1, 1]} : vector<24x128xf32> to vector<8x128xf32>
    %49 = arith.mulf %47, %48 : vector<8x128xf32>
    %50 = vector.extract_strided_slice %46 {offsets = [0, 0], sizes = [8, 128], strides = [1, 1]} : vector<24x128xf32> to vector<8x128xf32>
    %51 = vector.extract_strided_slice %46 {offsets = [16, 0], sizes = [8, 128], strides = [1, 1]} : vector<24x128xf32> to vector<8x128xf32>
    %52 = arith.mulf %50, %51 : vector<8x128xf32>
    %53 = vector.extract_strided_slice %46 {offsets = [8, 0], sizes = [8, 128], strides = [1, 1]} : vector<24x128xf32> to vector<8x128xf32>
    %54 = vector.extract_strided_slice %46 {offsets = [16, 0], sizes = [8, 128], strides = [1, 1]} : vector<24x128xf32> to vector<8x128xf32>
    %55 = arith.mulf %53, %54 : vector<8x128xf32>
    %56 = tpu.concatenate %40, %49, %52, %55 in 0 : vector<48x128xf32>, vector<8x128xf32>, vector<8x128xf32>, vector<8x128xf32> -> vector<72x128xf32>
    %c0_7 = arith.constant 0 : index
    %c0_8 = arith.constant 0 : index
    %57 = vector.load %arg4[%c0_7, %c0_8] : memref<32x72xf32, #tpu.memory_space<vmem>>, vector<32x72xf32>
    %cst_9 = arith.constant dense<0.000000e+00> : vector<32x128xf32>
    %58 = tpu.matmul %57, %56, %cst_9 {dimension_numbers = #tpu.dot_dimension_numbers<[1], [0], [0], [1], [0, 0, 1, 1], [], []>} : vector<32x72xf32>, vector<72x128xf32>, vector<32x128xf32> -> vector<32x128xf32>
    %59 = arith.addf %45, %58 : vector<32x128xf32>
    %c0_10 = arith.constant 0 : index
    %c0_11 = arith.constant 0 : index
    %60 = vector.load %arg6[%c0_10, %c0_11] : memref<32x8xf32, #tpu.memory_space<vmem>>, vector<32x1xf32>
    %c0_12 = arith.constant 0 : index
    %c1 = arith.constant 1 : index
    %61 = vector.load %arg6[%c0_12, %c1] : memref<32x8xf32, #tpu.memory_space<vmem>>, vector<32x1xf32>
    %cst_13 = arith.constant dense<0.000000e+00> : vector<128xf32>
    %62 = vector.multi_reduction <add>, %59, %cst_13 [0] : vector<32x128xf32> to vector<128xf32>
    %63 = vector.shape_cast %62 : vector<128xf32> to vector<1x128xf32>
    %cst_14 = arith.constant 3.200000e+01 : f32
    %64 = vector.broadcast %cst_14 : f32 to vector<1x128xf32>
    %65 = arith.divf %63, %64 : vector<1x128xf32>
    %66 = vector.broadcast %65 : vector<1x128xf32> to vector<32x128xf32>
    %67 = arith.subf %59, %66 : vector<32x128xf32>
    %68 = arith.mulf %67, %67 : vector<32x128xf32>
    %cst_15 = arith.constant dense<0.000000e+00> : vector<128xf32>
    %69 = vector.multi_reduction <add>, %68, %cst_15 [0] : vector<32x128xf32> to vector<128xf32>
    %70 = vector.shape_cast %69 : vector<128xf32> to vector<1x128xf32>
    %cst_16 = arith.constant 3.200000e+01 : f32
    %71 = vector.broadcast %cst_16 : f32 to vector<1x128xf32>
    %72 = arith.divf %70, %71 : vector<1x128xf32>
    %cst_17 = arith.constant 9.99999974E-6 : f32
    %73 = vector.broadcast %cst_17 : f32 to vector<1x128xf32>
    %74 = arith.addf %72, %73 : vector<1x128xf32>
    %75 = math.rsqrt %74 : vector<1x128xf32>
    %76 = vector.broadcast %75 : vector<1x128xf32> to vector<32x128xf32>
    %77 = arith.mulf %67, %76 : vector<32x128xf32>
    %78 = vector.broadcast %60 : vector<32x1xf32> to vector<32x128xf32>
    %79 = arith.mulf %77, %78 : vector<32x128xf32>
    %80 = vector.broadcast %61 : vector<32x1xf32> to vector<32x128xf32>
    %81 = arith.addf %79, %80 : vector<32x128xf32>
    %cst_18 = arith.constant 0.000000e+00 : f32
    %82 = vector.broadcast %cst_18 : f32 to vector<32x128xf32>
    %83 = arith.maximumf %81, %82 : vector<32x128xf32>
    %c0_19 = arith.constant 0 : index
    %c0_20 = arith.constant 0 : index
    %84 = vector.load %arg5[%c0_19, %c0_20] : memref<32x32xf32, #tpu.memory_space<vmem>>, vector<32x32xf32>
    %cst_21 = arith.constant dense<0.000000e+00> : vector<32x128xf32>
    %85 = tpu.matmul %84, %83, %cst_21 {dimension_numbers = #tpu.dot_dimension_numbers<[1], [0], [0], [1], [0, 0, 1, 1], [], []>} : vector<32x32xf32>, vector<32x128xf32>, vector<32x128xf32> -> vector<32x128xf32>
    %c0_22 = arith.constant 0 : index
    %c2 = arith.constant 2 : index
    %86 = vector.load %arg6[%c0_22, %c2] : memref<32x8xf32, #tpu.memory_space<vmem>>, vector<32x1xf32>
    %87 = vector.broadcast %86 : vector<32x1xf32> to vector<32x128xf32>
    %88 = arith.addf %85, %87 : vector<32x128xf32>
    %c0_23 = arith.constant 0 : index
    %c3 = arith.constant 3 : index
    %89 = vector.load %arg6[%c0_23, %c3] : memref<32x8xf32, #tpu.memory_space<vmem>>, vector<32x1xf32>
    %c0_24 = arith.constant 0 : index
    %c4 = arith.constant 4 : index
    %90 = vector.load %arg6[%c0_24, %c4] : memref<32x8xf32, #tpu.memory_space<vmem>>, vector<32x1xf32>
    %cst_25 = arith.constant dense<0.000000e+00> : vector<128xf32>
    %91 = vector.multi_reduction <add>, %88, %cst_25 [0] : vector<32x128xf32> to vector<128xf32>
    %92 = vector.shape_cast %91 : vector<128xf32> to vector<1x128xf32>
    %cst_26 = arith.constant 3.200000e+01 : f32
    %93 = vector.broadcast %cst_26 : f32 to vector<1x128xf32>
    %94 = arith.divf %92, %93 : vector<1x128xf32>
    %95 = vector.broadcast %94 : vector<1x128xf32> to vector<32x128xf32>
    %96 = arith.subf %88, %95 : vector<32x128xf32>
    %97 = arith.mulf %96, %96 : vector<32x128xf32>
    %cst_27 = arith.constant dense<0.000000e+00> : vector<128xf32>
    %98 = vector.multi_reduction <add>, %97, %cst_27 [0] : vector<32x128xf32> to vector<128xf32>
    %99 = vector.shape_cast %98 : vector<128xf32> to vector<1x128xf32>
    %cst_28 = arith.constant 3.200000e+01 : f32
    %100 = vector.broadcast %cst_28 : f32 to vector<1x128xf32>
    %101 = arith.divf %99, %100 : vector<1x128xf32>
    %cst_29 = arith.constant 9.99999974E-6 : f32
    %102 = vector.broadcast %cst_29 : f32 to vector<1x128xf32>
    %103 = arith.addf %101, %102 : vector<1x128xf32>
    %104 = math.rsqrt %103 : vector<1x128xf32>
    %105 = vector.broadcast %104 : vector<1x128xf32> to vector<32x128xf32>
    %106 = arith.mulf %96, %105 : vector<32x128xf32>
    %107 = vector.broadcast %89 : vector<32x1xf32> to vector<32x128xf32>
    %108 = arith.mulf %106, %107 : vector<32x128xf32>
    %109 = vector.broadcast %90 : vector<32x1xf32> to vector<32x128xf32>
    %110 = arith.addf %108, %109 : vector<32x128xf32>
    %cst_30 = arith.constant 0.000000e+00 : f32
    %111 = vector.broadcast %cst_30 : f32 to vector<32x128xf32>
    %112 = arith.maximumf %110, %111 : vector<32x128xf32>
    %c0_31 = arith.constant 0 : index
    %c5 = arith.constant 5 : index
    %113 = vector.load %arg6[%c0_31, %c5] : memref<32x8xf32, #tpu.memory_space<vmem>>, vector<32x1xf32>
    %114 = vector.broadcast %113 : vector<32x1xf32> to vector<32x128xf32>
    %115 = arith.mulf %112, %114 : vector<32x128xf32>
    %cst_32 = arith.constant dense<0.000000e+00> : vector<128xf32>
    %116 = vector.multi_reduction <add>, %115, %cst_32 [0] : vector<32x128xf32> to vector<128xf32>
    %117 = vector.shape_cast %116 : vector<128xf32> to vector<1x128xf32>
    %c0_33 = arith.constant 0 : index
    %c6 = arith.constant 6 : index
    %118 = vector.load %arg6[%c0_33, %c6] : memref<32x8xf32, #tpu.memory_space<vmem>>, vector<1x1xf32>
    %119 = vector.broadcast %118 : vector<1x1xf32> to vector<1x128xf32>
    %120 = arith.addf %117, %119 : vector<1x128xf32>
    %121 = arith.negf %120 : vector<1x128xf32>
    %122 = math.exp %121 : vector<1x128xf32>
    %cst_34 = arith.constant 1.000000e+00 : f32
    %123 = vector.broadcast %cst_34 : f32 to vector<1x128xf32>
    %124 = arith.addf %123, %122 : vector<1x128xf32>
    %125 = arith.divf %123, %124 : vector<1x128xf32>
    %126 = vector.shape_cast %125 : vector<1x128xf32> to vector<1x128xf32>
    %127 = vector.broadcast %126 : vector<1x128xf32> to vector<8x128xf32>
    %c0_35 = arith.constant 0 : index
    %c0_36 = arith.constant 0 : index
    %128 = vector.load %arg7[%c0_35, %c0_36] : memref<8x128xf32, #tpu.memory_space<vmem>>, vector<8x128xf32>
    tpu.vector_store %arg7[%c0_35, %c0_36], %127 {strides = array<i32>} : memref<8x128xf32, #tpu.memory_space<vmem>>, vector<8x128xf32>,
    return
  }
  func.func @transform_0(%arg0: i32) -> (i32, i32) {
    %c0_i32 = arith.constant 0 : i32
    %c0_i32_0 = arith.constant 0 : i32
    return %c0_i32, %arg0 : i32, i32
  }
  func.func @transform_1(%arg0: i32) -> (i32, i32) {
    %c0_i32 = arith.constant 0 : i32
    %c0_i32_0 = arith.constant 0 : i32
    return %c0_i32, %arg0 : i32, i32
  }
  func.func @transform_2(%arg0: i32) -> (i32, i32) {
    %c0_i32 = arith.constant 0 : i32
    %c0_i32_0 = arith.constant 0 : i32
    %c0_i32_1 = arith.constant 0 : i32
    return %c0_i32, %c0_i32_0 : i32, i32
  }
  func.func @transform_3(%arg0: i32) -> (i32, i32) {
    %c0_i32 = arith.constant 0 : i32
    %c0_i32_0 = arith.constant 0 : i32
    %c0_i32_1 = arith.constant 0 : i32
    return %c0_i32, %c0_i32_0 : i32, i32
  }
  func.func @transform_4(%arg0: i32) -> (i32, i32) {
    %c0_i32 = arith.constant 0 : i32
    %c0_i32_0 = arith.constant 0 : i32
    %c0_i32_1 = arith.constant 0 : i32
    return %c0_i32, %c0_i32_0 : i32, i32
  }
  func.func @transform_5(%arg0: i32) -> (i32, i32) {
    %c0_i32 = arith.constant 0 : i32
    %c0_i32_0 = arith.constant 0 : i32
    %c0_i32_1 = arith.constant 0 : i32
    return %c0_i32, %c0_i32_0 : i32, i32
  }
  func.func @transform_6(%arg0: i32) -> (i32, i32) {
    %c0_i32 = arith.constant 0 : i32
    %c0_i32_0 = arith.constant 0 : i32
    return %arg0, %c0_i32 : i32, i32
  }
}

</mosaic_0001>

<bundles_post_ra>
// kernel: mul.15
= control target key start
LH: loop header
LB: loop body
LE: loop exit
PB: predicated region body
PF: predicated region fallthrough
CT: control target
= control target key end

     0   :  { %vm7_vm0 = vcmask 64512   ;;  %s30_s8 = smov 8   ;;  %vm13_vm1 = vcmask 195712   ;;  %vm19_vm2 = vcmask 130112   ;;  %s47_s0 = inlined_call_operand.vmem [shape: f32[3,8], index: 0, kind: input, shape index: {}]   ;;  %s48_s1 = inlined_call_operand.vmem [shape: f32[24], index: 1, kind: output, shape index: {}]  }
   0x1   :  { %v4_v0 = vld [vmem:[%s47_s0] sm:$0xf]  ;;  %s29_s0 = smov 16  }
   0x2   :  { %5 = vst [vmem:[#allocation1] sm:$0xf] %v4_v0 }
   0x9   :  { %v10_v1 = vld [vmem:[#allocation1 + $0x2] sm:$0x1]   ;;  %v6_v2 = vld [vmem:[#allocation1] sm:$0x1]   ;;  %v16_v3 = vld [vmem:[#allocation1 + $0x1] sm:$0x1]  }
   0xa   :  { %11 = vrot.lane.b32.xlu0 %v10_v1, %s29_s0  ;;  %8 = vst.msk [vmem:[#allocation0] sm:$0x1] %vm7_vm0, %v6_v2  }
   0xe   :  { %17 = vrot.lane.b32.xlu0 %v16_v3, %s30_s8 }
  0x7c   :  { %v12_v4 = vpop.permute.xlu0 %11  }
  0x7d   :  { %14 = vst.msk [vmem:[#allocation0] sm:$0x1] %vm13_vm1, %v12_v4  }
  0x80   :  { %v18_v5 = vpop.permute.xlu0 %17  }
  0x81   :  { %20 = vst.msk [vmem:[#allocation0] sm:$0x1] %vm19_vm2, %v18_v5  }
  0x88   :  { %v24_v6 = vld [vmem:[#allocation0] sm:$0x1] }
  0x89   :  { %26 = vst [vmem:[%s48_s1] sm:$0x1] %v24_v6 }

// kernel: mul.11
= control target key start
LH: loop header
LB: loop body
LE: loop exit
PB: predicated region body
PF: predicated region fallthrough
CT: control target
= control target key end

     0   :  { %vm7_vm0 = vcmask 130048   ;;  %s30_s8 = smov 16   ;;  %vm13_vm1 = vcmask 392448   ;;  %vm19_vm2 = vcmask 261248   ;;  %s47_s0 = inlined_call_operand.vmem [shape: f32[3,16], index: 0, kind: input, shape index: {}]   ;;  %s48_s1 = inlined_call_operand.vmem [shape: f32[48], index: 1, kind: output, shape index: {}]  }
   0x1   :  { %v4_v0 = vld [vmem:[%s47_s0] sm:$0xf]  ;;  %s29_s0 = smov 32  }
   0x2   :  { %5 = vst [vmem:[#allocation1] sm:$0xf] %v4_v0 }
   0x9   :  { %v10_v1 = vld [vmem:[#allocation1 + $0x2] sm:$0x1]   ;;  %v6_v2 = vld [vmem:[#allocation1] sm:$0x1]   ;;  %v16_v3 = vld [vmem:[#allocation1 + $0x1] sm:$0x1]  }
   0xa   :  { %11 = vrot.lane.b32.xlu0 %v10_v1, %s29_s0  ;;  %8 = vst.msk [vmem:[#allocation0] sm:$0x1] %vm7_vm0, %v6_v2  }
   0xe   :  { %17 = vrot.lane.b32.xlu0 %v16_v3, %s30_s8 }
  0x7c   :  { %v12_v4 = vpop.permute.xlu0 %11  }
  0x7d   :  { %14 = vst.msk [vmem:[#allocation0] sm:$0x1] %vm13_vm1, %v12_v4  }
  0x80   :  { %v18_v5 = vpop.permute.xlu0 %17  }
  0x81   :  { %20 = vst.msk [vmem:[#allocation0] sm:$0x1] %vm19_vm2, %v18_v5  }
  0x88   :  { %v24_v6 = vld [vmem:[#allocation0] sm:$0x1] }
  0x89   :  { %26 = vst [vmem:[%s48_s1] sm:$0x1] %v24_v6 }

// kernel: forward_pallas.1
= control target key start
LH: loop header
LB: loop body
LE: loop exit
PB: predicated region body
PF: predicated region fallthrough
CT: control target
= control target key end

     0   :  { %v24_v0 = vlaneseq  ;;  %v1063_v1 = vmov 0.0|0.0   ;;  %vm1064_vm0 = vmmov 0   ;;  %v1065_v2 = vmov 0.0   ;;  %s1422_s0 = inlined_call_operand.vmem [shape: s32[6,128], index: 0, kind: input, shape index: {}]   ;;  %s1423_s1 = inlined_call_operand.vmem [shape: f32[8,128], index: 1, kind: input, shape index: {}]   ;;  %s1424_s2 = inlined_call_operand.vmem [shape: f32[56,80], index: 2, kind: input, shape index: {}]   ;;  %s1425_s3 = inlined_call_operand.vmem [shape: f32[32,72], index: 3, kind: input, shape index: {}]   ;;  %s1426_s5 = inlined_call_operand.vmem [shape: f32[32,8], index: 5, kind: input, shape index: {}]   ;;  %s1427_s4 = inlined_call_operand.vmem [shape: f32[32,32], index: 4, kind: input, shape index: {}]   ;;  %s1428_s6 = inlined_call_operand.vmem [shape: f32[8,128], index: 6, kind: output, shape index: {}]  }
   0x1   :  { %989 = vmatprep.subr.bf16.mxu0 %v1063_v1  ;;  %930 = vmatprep.mubr.msk.f32.mxu0 %vm1064_vm0, %v1065_v2  ;;  %v1116_v4 = vld [vmem:[%s1422_s0] sm:$0x3f] }
   0x2   :  { %v1111_v3 = vshrl.u32 %v24_v0, 7 }
   0x4   :  { %v1119_v5 = vadd.s32 8, %v1111_v3  ;;  %v36_v6 = vsub.s32 0, %v1111_v3  ;;  %v76_v7 = vsub.s32 1, %v1111_v3  ;;  %v116_v8 = vsub.s32 2, %v1111_v3 }
   0x5   :  { %v1125_v9 = vadd.s32 16, %v1111_v3  ;;  %v1128_v10 = vadd.s32 24, %v1111_v3  ;;  %v1142_v14 = vadd.s32 32, %v1111_v3  ;;  %v1145_v15 = vadd.s32 40, %v1111_v3 }
   0x6   :  { %v1133_v11 = vrot.slane %v1116_v4, %v36_v6  ;;  %v1136_v12 = vrot.slane %v1116_v4, %v76_v7  ;;  %v1139_v13 = vrot.slane %v1116_v4, %v116_v8  ;;  %v1148_v16 = vadd.s32 48, %v1111_v3 }
   0x7   :  { %v1151_v17 = vadd.s32 56, %v1111_v3  ;;  %v1154_v18 = vadd.s32 64, %v1111_v3 }
   0x8   :  { %vm38_vm1 = vcmp.eq.s32.totalorder %v1111_v3, %v1133_v11  ;;  %vm39_vm2 = vcmp.eq.s32.totalorder %v1119_v5, %v1133_v11  ;;  %vm78_vm3 = vcmp.eq.s32.totalorder %v1111_v3, %v1136_v12  ;;  %vm79_vm4 = vcmp.eq.s32.totalorder %v1119_v5, %v1136_v12 }
   0x9   :  { %v811_v19 = vsel %vm38_vm1, 1.0, %v1065_v2  ;;  %v812_v20 = vsel %vm39_vm2, 1.0, %v1065_v2  ;;  %v820_v21 = vsel %vm78_vm3, 1.0, %v1065_v2  ;;  %v821_v22 = vsel %vm79_vm4, 1.0, %v1065_v2 }
   0xa   :  { %v105_v23 = vadd.f32 %v820_v21, %v811_v19  ;;  %v106_v24 = vadd.f32 %v821_v22, %v812_v20  ;;  %vm118_vm5 = vcmp.eq.s32.totalorder %v1111_v3, %v1139_v13  ;;  %vm119_vm6 = vcmp.eq.s32.totalorder %v1119_v5, %v1139_v13  ;;  %v243_v19 = vld [vmem:[%s1424_s2 + $0x20] sm:$0xff]  ;;  %v244_v20 = vld [vmem:[%s1424_s2 + $0x28] sm:$0xff]  ;;  %v245_v21 = vld [vmem:[%s1424_s2 + $0x30] sm:$0xff] }
   0xb   :  { %v829_v25 = vsel %vm118_vm5, 1.0, %v1065_v2  ;;  %v830_v26 = vsel %vm119_vm6, 1.0, %v1065_v2  ;;  %vm40_vm7 = vcmp.eq.s32.totalorder %v1125_v9, %v1133_v11  ;;  %vm41_vm8 = vcmp.eq.s32.totalorder %v1128_v10, %v1133_v11 }
   0xc   :  { %v145_v27 = vadd.f32 %v829_v25, %v105_v23  ;;  %v146_v28 = vadd.f32 %v830_v26, %v106_v24  ;;  %v813_v29 = vsel %vm40_vm7, 1.0, %v1065_v2  ;;  %v814_v30 = vsel %vm41_vm8, 1.0, %v1065_v2 }
   0xd   :  { %vm80_vm9 = vcmp.eq.s32.totalorder %v1125_v9, %v1136_v12  ;;  %vm81_vm10 = vcmp.eq.s32.totalorder %v1128_v10, %v1136_v12  ;;  %vm120_vm11 = vcmp.eq.s32.totalorder %v1125_v9, %v1139_v13  ;;  %vm121_vm12 = vcmp.eq.s32.totalorder %v1128_v10, %v1139_v13 }
   0xe   :  { %v990_v31 = vpack.c.bf16 %v146_v28, %v145_v27  ;;  %v822_v32 = vsel %vm80_vm9, 1.0, %v1065_v2  ;;  %v823_v33 = vsel %vm81_vm10, 1.0, %v1065_v2  ;;  %v831_v34 = vsel %vm120_vm11, 1.0, %v1065_v2 }
   0xf   :  { %v107_v35 = vadd.f32 %v822_v32, %v813_v29  ;;  %v108_v36 = vadd.f32 %v823_v33, %v814_v30  ;;  %v832_v37 = vsel %vm121_vm12, 1.0, %v1065_v2  ;;  %vm42_vm13 = vcmp.eq.s32.totalorder %v1142_v14, %v1133_v11 }
  0x10   :  { %991 = vmatpush3.bf16.msra.mxu0 %v990_v31  ;;  %vm43_vm14 = vcmp.eq.s32.totalorder %v1145_v15, %v1133_v11  ;;  %v815_v38 = vsel %vm42_vm13, 1.0, %v1065_v2  ;;  %vm82_vm15 = vcmp.eq.s32.totalorder %v1142_v14, %v1136_v12  ;;  %vm83_vm1 = vcmp.eq.s32.totalorder %v1145_v15, %v1136_v12 }
  0x11   :  { %992 = vmatprep.subr.bf16.mxu0 %v1063_v1  ;;  %v147_v39 = vadd.f32 %v831_v34, %v107_v35  ;;  %v148_v40 = vadd.f32 %v832_v37, %v108_v36  ;;  %v816_v41 = vsel %vm43_vm14, 1.0, %v1065_v2  ;;  %v824_v42 = vsel %vm82_vm15, 1.0, %v1065_v2 }
  0x12   :  { %v825_v43 = vsel %vm83_vm1, 1.0, %v1065_v2  ;;  %v109_v44 = vadd.f32 %v824_v42, %v815_v38  ;;  %vm122_vm2 = vcmp.eq.s32.totalorder %v1142_v14, %v1139_v13  ;;  %vm123_vm3 = vcmp.eq.s32.totalorder %v1145_v15, %v1139_v13 }
  0x13   :  { %v993_v45 = vpack.c.bf16 %v148_v40, %v147_v39  ;;  %v110_v46 = vadd.f32 %v825_v43, %v816_v41  ;;  %v833_v47 = vsel %vm122_vm2, 1.0, %v1065_v2  ;;  %v834_v48 = vsel %vm123_vm3, 1.0, %v1065_v2 }
  0x14   :  { %v149_v49 = vadd.f32 %v833_v47, %v109_v44  ;;  %vm44_vm4 = vcmp.eq.s32.totalorder %v1148_v16, %v1133_v11  ;;  %vm45_vm5 = vcmp.eq.s32.totalorder %v1151_v17, %v1133_v11  ;;  %vm84_vm6 = vcmp.eq.s32.totalorder %v1148_v16, %v1136_v12 }
  0x15   :  { %994 = vmatpush3.bf16.msra.mxu0 %v993_v45  ;;  %v150_v50 = vadd.f32 %v834_v48, %v110_v46  ;;  %v817_v51 = vsel %vm44_vm4, 1.0, %v1065_v2  ;;  %v818_v52 = vsel %vm45_vm5, 1.0, %v1065_v2  ;;  %vm85_vm7 = vcmp.eq.s32.totalorder %v1151_v17, %v1136_v12 }
  0x16   :  { %995 = vmatprep.subr.bf16.mxu0 %v1063_v1  ;;  %v826_v53 = vsel %vm84_vm6, 1.0, %v1065_v2  ;;  %v827_v54 = vsel %vm85_vm7, 1.0, %v1065_v2  ;;  %vm124_vm8 = vcmp.eq.s32.totalorder %v1148_v16, %v1139_v13  ;;  %vm125_vm9 = vcmp.eq.s32.totalorder %v1151_v17, %v1139_v13  ;;  %v239_v16 = vld [vmem:[%s1424_s2] sm:$0xff]  ;;  %v240_v17 = vld [vmem:[%s1424_s2 + $0x8] sm:$0xff] }
  0x17   :  { %v996_v55 = vpack.c.bf16 %v150_v50, %v149_v49  ;;  %v111_v56 = vadd.f32 %v826_v53, %v817_v51  ;;  %v112_v57 = vadd.f32 %v827_v54, %v818_v52  ;;  %v835_v58 = vsel %vm124_vm8, 1.0, %v1065_v2 }
  0x18   :  { %v836_v59 = vsel %vm125_vm9, 1.0, %v1065_v2  ;;  %vm46_vm10 = vcmp.eq.s32.totalorder %v1154_v18, %v1133_v11  ;;  %vm86_vm11 = vcmp.eq.s32.totalorder %v1154_v18, %v1136_v12  ;;  %vm126_vm12 = vcmp.eq.s32.totalorder %v1154_v18, %v1139_v13  ;;  %v238_v11 = vld [vmem:[%s1423_s1] sm:$0xff]  ;;  %v242_v18 = vld [vmem:[%s1424_s2 + $0x18] sm:$0xff] }
  0x19   :  { %997 = vmatpush3.bf16.msra.mxu0 %v996_v55  ;;  %v151_v60 = vadd.f32 %v835_v58, %v111_v56  ;;  %v152_v61 = vadd.f32 %v836_v59, %v112_v57  ;;  %v819_v62 = vsel %vm46_vm10, 1.0, %v1065_v2  ;;  %v828_v63 = vsel %vm86_vm11, 1.0, %v1065_v2  ;;  %v1340_v58 = vld [vmem:[%s1426_s5 + $0x8] sm:$0xff]  ;;  %v1347_v59 = vld [vmem:[%s1426_s5 + $0x10] sm:$0xff] }
  0x1a   :  { %998 = vmatprep.subr.bf16.mxu0 %v1063_v1  ;;  %v113_v0 = vadd.f32 %v828_v63, %v819_v62  ;;  %v837_v7 = vsel %vm126_vm12, 1.0, %v1065_v2  ;;  %vm246_vm13 = vcmask 654336   ;;  %v156_v22 = vsub.s32 3, %v1111_v3 }
  0x1b   :  { %v999_v8 = vpack.c.bf16 %v152_v61, %v151_v60  ;;  %v184_v23 = vsub.s32 4, %v1111_v3  ;;  %v212_v26 = vsub.s32 5, %v1111_v3  ;;  %v1067_v57 = vmov 1   ;;  %v1352_v60 = vld [vmem:[%s1426_s5 + $0x18] sm:$0xff] }
  0x1c   :  { %v153_v12 = vadd.f32 %v837_v7, %v113_v0  ;;  %v157_v24 = vrot.slane %v1116_v4, %v156_v22  ;;  %1039 = vset.pattern.permute.xlu1 %v1067_v57 }
  0x1d   :  { %1000 = vmatpush3.bf16.msra.mxu0 %v999_v8  ;;  %v185_v25 = vrot.slane %v1116_v4, %v184_v23  ;;  %v213_v33 = vrot.slane %v1116_v4, %v212_v26  ;;  %v374_v26 = vld [vmem:[%s1425_s3 + $0x18] sm:$0xff] }
  0x1e   :  { %1001 = vmatprep.subr.bf16.mxu0 %v1063_v1  ;;  %v1002_v13 = vpack.c.bf16 %v238_v11, %v153_v12  ;;  %v241_v1 = vld [vmem:[%s1424_s2 + $0x10] sm:$0xff]  ;;  %vm158_vm14 = vcmp.eq.s32.totalorder %v1111_v3, %v157_v24  ;;  %vm160_vm4 = vcmp.eq.s32.totalorder %v1125_v9, %v157_v24  ;;  %vm161_vm5 = vcmp.eq.s32.totalorder %v1128_v10, %v157_v24 }
  0x1f   :  { %vm186_vm15 = vcmp.eq.s32.totalorder %v1111_v3, %v185_v25  ;;  %vm187_vm1 = vcmp.eq.s32.totalorder %v1119_v5, %v185_v25  ;;  %v838_v27 = vsel %vm158_vm14, 1.0, %v1065_v2  ;;  %vm214_vm2 = vcmp.eq.s32.totalorder %v1111_v3, %v213_v33 }
  0x20   :  { %v844_v29 = vsel %vm186_vm15, 1.0, %v1065_v2  ;;  %v845_v30 = vsel %vm187_vm1, 1.0, %v1065_v2  ;;  %vm215_vm3 = vcmp.eq.s32.totalorder %v1119_v5, %v213_v33  ;;  %v850_v34 = vsel %vm214_vm2, 1.0, %v1065_v2 }
  0x21   :  { %1003 = vmatpush3.bf16.msra.mxu0 %v1002_v13  ;;  %v204_v31 = vadd.f32 %v844_v29, %v838_v27  ;;  %v851_v35 = vsel %vm215_vm3, 1.0, %v1065_v2  ;;  %v840_v36 = vsel %vm160_vm4, 1.0, %v1065_v2  ;;  %v841_v37 = vsel %vm161_vm5, 1.0, %v1065_v2  ;;  %v564_v27 = vld [vmem:[%s1427_s4] sm:$0xff] }
  0x22   :  { %vm188_vm6 = vcmp.eq.s32.totalorder %v1125_v9, %v185_v25  ;;  %vm189_vm7 = vcmp.eq.s32.totalorder %v1128_v10, %v185_v25  ;;  %vm216_vm8 = vcmp.eq.s32.totalorder %v1125_v9, %v213_v33  ;;  %vm217_vm9 = vcmp.eq.s32.totalorder %v1128_v10, %v213_v33 }
  0x23   :  { %v232_v38 = vadd.f32 %v850_v34, %v204_v31  ;;  %v846_v4 = vsel %vm188_vm6, 1.0, %v1065_v2  ;;  %v852_v43 = vsel %vm216_vm8, 1.0, %v1065_v2  ;;  %v853_v44 = vsel %vm217_vm9, 1.0, %v1065_v2 }
  0x24   :  { %931 = vmatmul.mubr.msk.f32.vlgmr.msra.gmra.mrb[0].mxu0 %vm246_vm13, %v239_v16  ;;  %v206_v41 = vadd.f32 %v846_v4, %v840_v36  ;;  %vm162_vm10 = vcmp.eq.s32.totalorder %v1142_v14, %v157_v24  ;;  %vm163_vm11 = vcmp.eq.s32.totalorder %v1145_v15, %v157_v24  ;;  %vm190_vm12 = vcmp.eq.s32.totalorder %v1142_v14, %v185_v25 }
  0x25   :  { %933 = vmatprep.mubr.msk.f32.mxu0 %vm1064_vm0, %v1065_v2  ;;  %v842_v9 = vsel %vm162_vm10, 1.0, %v1065_v2  ;;  %v843_v10 = vsel %vm163_vm11, 1.0, %v1065_v2  ;;  %v848_v47 = vsel %vm190_vm12, 1.0, %v1065_v2  ;;  %vm218_vm14 = vcmp.eq.s32.totalorder %v1142_v14, %v213_v33  ;;  %v371_v14 = vld [vmem:[%s1425_s3] sm:$0xff] }
  0x26   :  { %v234_v45 = vadd.f32 %v852_v43, %v206_v41  ;;  %v208_v50 = vadd.f32 %v848_v47, %v842_v9  ;;  %v854_v51 = vsel %vm218_vm14, 1.0, %v1065_v2  ;;  %vm375_vm15 = vcmask 588800  }
  0x27   :  { %969 = vmatprep.mubr.msk.f32.mxu1 %vm375_vm15, %v371_v14  ;;  %vm584_vm1 = vcmask 261120   ;;  %v1069_v29 = vmov 3   ;;  %v1071_v31 = vmov 5  }
  0x28   :  { %934 = vmatmul.mubr.msk.f32.gmra.mrb[2].mxu0 %vm246_vm13, %v240_v17  ;;  %v236_v54 = vadd.f32 %v854_v51, %v208_v50 }
  0x29   :  { %936 = vmatprep.mubr.msk.f32.mxu0 %vm1064_vm0, %v1065_v2 }
  0x2c   :  { %937 = vmatmul.mubr.msk.f32.gmra.mrb[4].mxu0 %vm246_vm13, %v241_v1 }
  0x2d   :  { %939 = vmatprep.mubr.msk.f32.mxu0 %vm1064_vm0, %v1065_v2 }
  0x30   :  { %940 = vmatmul.mubr.msk.f32.gmra.mrb[6].mxu0 %vm246_vm13, %v242_v18 }
  0x31   :  { %942 = vmatprep.mubr.msk.f32.mxu0 %vm1064_vm0, %v1065_v2 }
  0x34   :  { %943 = vmatmul.mubr.msk.f32.gmra.mrb[8].mxu0 %vm246_vm13, %v243_v19 }
  0x35   :  { %945 = vmatprep.mubr.msk.f32.mxu0 %vm1064_vm0, %v1065_v2 }
  0x38   :  { %946 = vmatmul.mubr.msk.f32.gmra.mrb[10].mxu0 %vm246_vm13, %v244_v20 }
  0x39   :  { %948 = vmatprep.mubr.msk.f32.mxu0 %vm1064_vm0, %v1065_v2  ;;  %vm159_vm0 = vcmp.eq.s32.totalorder %v1119_v5, %v157_v24  ;;  %v847_v5 = vsel %vm189_vm7, 1.0, %v1065_v2  ;;  %v372_v24 = vld [vmem:[%s1425_s3 + $0x8] sm:$0xff] }
  0x3a   :  { %v839_v28 = vsel %vm159_vm0, 1.0, %v1065_v2  ;;  %v207_v42 = vadd.f32 %v847_v5, %v841_v37  ;;  %vm219_vm0 = vcmp.eq.s32.totalorder %v1145_v15, %v213_v33  ;;  %v789_v37 = vld [vmem:[%s1426_s5] sm:$0x1] }
  0x3b   :  { %v205_v32 = vadd.f32 %v845_v30, %v839_v28  ;;  %v855_v53 = vsel %vm219_vm0, 1.0, %v1065_v2  ;;  %v1068_v28 = vmov 2   ;;  %v1070_v30 = vmov 4  }
  0x3c   :  { %949 = vmatmul.mubr.msk.f32.gmra.mrb[12].mxu0 %vm246_vm13, %v245_v21  ;;  %v235_v46 = vadd.f32 %v853_v44, %v207_v42  ;;  %vm191_vm13 = vcmp.eq.s32.totalorder %v1145_v15, %v185_v25  ;;  %v1066_v15 = vmov 0   ;;  %v373_v25 = vld [vmem:[%s1425_s3 + $0x10] sm:$0xff] }
  0x3d   :  { %v233_v39 = vadd.f32 %v851_v35, %v205_v32  ;;  %v849_v49 = vsel %vm191_vm13, 1.0, %v1065_v2  ;;  %1038 = vset.pattern.permute.xlu0 %v1066_v15  ;;  %v1333_v2 = vld [vmem:[%s1426_s5] sm:$0xff]  ;;  %v1072_v32 = vmov 6  }
  0x3e   :  { %v1008_v48 = vpack.c.bf16 %v235_v46, %v234_v45  ;;  %v209_v52 = vadd.f32 %v849_v49, %v843_v10  ;;  %518 = vperm.xlu0 %1038, %v1333_v2   ;;  %541 = vperm.xlu1 %1039, %v1333_v2  }
  0x3f   :  { %v1004_v40 = vpack.c.bf16 %v233_v39, %v232_v38 }
  0x40   :  { %v237_v55 = vadd.f32 %v855_v53, %v209_v52 }
  0x41   :  { %1005 = vmatprep.subr.bf16.mxu1 %v1004_v40 }
  0x42   :  { %1007 = vmatpush3.bf16.msra.mxu1 %v1004_v40  ;;  %v1012_v56 = vpack.c.bf16 %v237_v55, %v236_v54  ;;  %523 = vperm.xlu0 %1038, %v1340_v58  }
  0x43   :  { %1009 = vmatprep.subr.bf16.mxu1 %v1008_v48  ;;  %545 = vperm.xlu1 %1039, %v1340_v58  }
  0x46   :  { %1011 = vmatpush3.bf16.msra.mxu1 %v1008_v48  ;;  %528 = vperm.xlu0 %1038, %v1347_v59  }
  0x47   :  { %1013 = vmatprep.subr.bf16.mxu1 %v1012_v56  ;;  %1040 = vset.pattern.permute.xlu1 %v1066_v15 }
  0x48   :  { %533 = vperm.xlu1 %1040, %v1352_v60  }
  0x4a   :  { %1015 = vmatpush3.bf16.msra.mxu1 %v1012_v56  ;;  %1041 = vset.pattern.permute.xlu0 %v1067_v57 }
  0x4b   :  { %549 = vperm.xlu0 %1041, %v1347_v59  }
  0x4c   :  { %1042 = vset.pattern.permute.xlu1 %v1067_v57 }
  0x4d   :  { %553 = vperm.xlu1 %1042, %v1352_v60  }
  0x4f   :  { %1044 = vset.pattern.permute.xlu0 %v1068_v28 }
  0x50   :  { %573 = vperm.xlu0 %1044, %v1340_v58  }
  0x51   :  { %1043 = vset.pattern.permute.xlu1 %v1068_v28 }
  0x52   :  { %569 = vperm.xlu1 %1043, %v1333_v2  }
  0x54   :  { %1045 = vset.pattern.permute.xlu0 %v1069_v29 }
  0x55   :  { %717 = vperm.xlu0 %1045, %v1333_v2  }
  0x56   :  { %577 = vperm.xlu1 %1043, %v1347_v59  }
  0x59   :  { %1047 = vset.pattern.permute.xlu0 %v1070_v30 }
  0x5a   :  { %581 = vperm.xlu1 %1043, %v1352_v60   ;;  %737 = vperm.xlu0 %1047, %v1333_v2  }
  0x5e   :  { %1046 = vset.pattern.permute.xlu1 %v1069_v29  ;;  %745 = vperm.xlu0 %1047, %v1347_v59  }
  0x5f   :  { %721 = vperm.xlu1 %1046, %v1340_v58  }
  0x62   :  { %1051 = vset.pattern.permute.xlu0 %v1071_v31 }
  0x63   :  { %725 = vperm.xlu1 %1046, %v1347_v59   ;;  %761 = vperm.xlu0 %1051, %v1333_v2  }
  0x67   :  { %1048 = vset.pattern.permute.xlu1 %v1070_v30  ;;  %773 = vperm.xlu0 %1051, %v1352_v60  }
  0x68   :  { %741 = vperm.xlu1 %1048, %v1340_v58  }
  0x6b   :  { %1054 = vset.pattern.permute.xlu0 %v1072_v32 }
  0x6c   :  { %1049 = vset.pattern.permute.xlu1 %v1069_v29 }
  0x6d   :  { %729 = vperm.xlu1 %1049, %v1352_v60  }
  0x71   :  { %1050 = vset.pattern.permute.xlu1 %v1070_v30 }
  0x72   :  { %749 = vperm.xlu1 %1050, %v1352_v60  }
  0x76   :  { %1052 = vset.pattern.permute.xlu1 %v1071_v31 }
  0x77   :  { %765 = vperm.xlu1 %1052, %v1340_v58  }
  0x7b   :  { %769 = vperm.xlu1 %1052, %v1347_v59  }
  0x7f   :  { %1053 = vset.pattern.permute.xlu1 %v1072_v32 }
  0x80   :  { %792 = vperm.xlu1 %1053, %v789_v37   ;;  %v566_v37 = vld [vmem:[%s1427_s4 + $0x10] sm:$0xff] }
  0xf7   :  { %v1358_v61 = vpop.f32.mrb[0].mxu0 }
  0xf8   :  { %v932_v62 = vpop.f32.mrb[1].mxu0 }
  0xf9   :  { %v519_v62 = vpop.permute.xlu0 %518 }
  0xfb   :  { %v1360_v63 = vpop.f32.mrb[2].mxu0 }
  0xfc   :  { %v935_v0 = vpop.f32.mrb[3].mxu0 }
  0xfd   :  { %v542_v0 = vpop.permute.xlu1 %541 }
  0xff   :  { %v1362_v7 = vpop.f32.mrb[4].mxu0 }
 0x100   :  { %v938_v8 = vpop.f32.mrb[5].mxu0 }
 0x101   :  { %v524_v8 = vpop.permute.xlu0 %523 }
 0x103   :  { %v1364_v11 = vpop.f32.mrb[6].mxu0 }
 0x104   :  { %v941_v12 = vpop.f32.mrb[7].mxu0 }
 0x107   :  { %v354_v13 = vpop.f32.mrb[8].mxu0 }
 0x108   :  { %v944_v16 = vpop.f32.mrb[9].mxu0 }
 0x10b   :  { %v359_v17 = vpop.f32.mrb[10].mxu0 }
 0x10c   :  { %v368_v1 = vmul.f32 %v359_v17, %v354_v13  ;;  %v947_v18 = vpop.f32.mrb[11].mxu0 }
 0x10f   :  { %v364_v19 = vpop.f32.mrb[12].mxu0 }
 0x110   :  { %v369_v20 = vmul.f32 %v364_v19, %v354_v13  ;;  %v370_v21 = vmul.f32 %v364_v19, %v359_v17  ;;  %v950_v22 = vpop.f32.mrb[13].mxu0  ;;  %v529_v13 = vpop.permute.xlu0 %528 }
 0x112   :  { %v1016_v23 = vpack.c.bf16 %v369_v20, %v368_v1 }
 0x114   :  { %1017 = vmatprep.subr.bf16.mxu1 %v1016_v23 }
 0x115   :  { %1019 = vmatpush3.bf16.msra.mxu1 %v1016_v23 }
 0x116   :  { %967 = vmatprep.subr.mxu1 %v370_v21 }
 0x119   :  { %968 = vmatpush3.msra.mxu1 %v370_v21  ;;  %v550_v21 = vpop.permute.xlu0 %549 }
 0x11a   :  { %970 = vmatmul.mubr.msk.f32.vlgmr.msra.gmra.mrb[0].mxu1 %vm375_vm15, %v372_v24 }
 0x11b   :  { %972 = vmatprep.mubr.msk.f32.mxu1 %vm375_vm15, %v373_v25 }
 0x11e   :  { %973 = vmatmul.mubr.msk.f32.gmra.mrb[2].mxu1 %vm375_vm15, %v374_v26 }
 0x11f   :  { %983 = vmatprep.mubr.msk.f32.mxu1 %vm584_vm1, %v564_v27 }
 0x1ed   :  { %v971_v33 = vpop.f32.mrb[0].mxu1 }
 0x1ee   :  { %v474_v34 = vadd.f32 %v971_v33, %v1360_v63  ;;  %v454_v35 = vpop.f32.mrb[1].mxu1 }
 0x1ef   :  { %v473_v36 = vadd.f32 %v454_v35, %v1358_v61 }
 0x1f1   :  { %v481_v38 = vadd.f32 %v474_v34, %v473_v36  ;;  %v974_v39 = vpop.f32.mrb[2].mxu1 }
 0x1f2   :  { %v476_v4 = vadd.f32 %v974_v39, %v1364_v11  ;;  %v464_v5 = vpop.f32.mrb[3].mxu1  ;;  %v546_v11 = vpop.permute.xlu1 %545 }
 0x1f3   :  { %v475_v40 = vadd.f32 %v464_v5, %v1362_v7 }
 0x1f5   :  { %v482_v41 = vadd.f32 %v481_v38, %v475_v40  ;;  %v567_v38 = vld [vmem:[%s1427_s4 + $0x18] sm:$0xff] }
 0x1f6   :  { %v534_v12 = vpop.permute.xlu1 %533 }
 0x1f7   :  { %v483_v42 = vadd.f32 %v482_v41, %v476_v4 }
 0x1f9   :  { %v484_v43 = vrot.slane %v483_v42, 4 }
 0x1fa   :  { %v554_v20 = vpop.permute.xlu1 %553 }
 0x1fb   :  { %v485_v44 = vadd.f32 %v484_v43, %v483_v42 }
 0x1fd   :  { %v486_v45 = vrot.slane %v485_v44, 2 }
 0x1fe   :  { %v570_v39 = vpop.permute.xlu1 %569 }
 0x1ff   :  { %v487_v46 = vadd.f32 %v486_v45, %v485_v44 }
 0x201   :  { %v488_v9 = vrot.slane %v487_v46, 1 }
 0x203   :  { %v489_v10 = vadd.f32 %v488_v9, %v487_v46 }
 0x205   :  { %v491_v47 = vmul.f32 0.03125, %v489_v10 }
 0x207   :  { %v494_v48 = vsub.f32 %v475_v40, %v491_v47  ;;  %v495_v49 = vsub.f32 %v476_v4, %v491_v47  ;;  %v492_v50 = vsub.f32 %v473_v36, %v491_v47  ;;  %v493_v51 = vsub.f32 %v474_v34, %v491_v47  ;;  %v565_v36 = vld [vmem:[%s1427_s4 + $0x8] sm:$0xff]  ;;  %v574_v4 = vpop.permute.xlu0 %573  ;;  %v578_v40 = vpop.permute.xlu1 %577 }
 0x209   :  { %v496_v52 = vmul.f32 %v492_v50, %v492_v50  ;;  %v497_v53 = vmul.f32 %v493_v51, %v493_v51  ;;  %v498_v54 = vmul.f32 %v494_v48, %v494_v48  ;;  %v499_v56 = vmul.f32 %v495_v49, %v495_v49 }
 0x20b   :  { %v500_v55 = vadd.f32 %v497_v53, %v496_v52  ;;  %v582_v10 = vpop.permute.xlu1 %581 }
 0x20d   :  { %v501_v14 = vadd.f32 %v500_v55, %v498_v54 }
 0x20f   :  { %v502_v15 = vadd.f32 %v501_v14, %v499_v56 }
 0x211   :  { %v503_v2 = vrot.slane %v502_v15, 4 }
 0x213   :  { %v504_v57 = vadd.f32 %v503_v2, %v502_v15 }
 0x215   :  { %v505_v58 = vrot.slane %v504_v57, 2 }
 0x217   :  { %v506_v59 = vadd.f32 %v505_v58, %v504_v57 }
 0x219   :  { %v507_v60 = vrot.slane %v506_v59, 1 }
 0x21b   :  { %v508_v61 = vadd.f32 %v507_v60, %v506_v59 }
 0x21d   :  { %v509_v63 = vmul.f32 0.03125, %v508_v61 }
 0x21f   :  { %v510_v7 = vadd.f32 1e-05, %v509_v63 }
 0x221   :  { %1055 = vrsqrt.f32 %v510_v7 }
 0x22b   :  { %v1056_v16 = vpop.eup %1055 }
 0x22c   :  { %v512_v17 = vmul.f32 %v1056_v16, %v492_v50  ;;  %v513_v1 = vmul.f32 %v1056_v16, %v493_v51  ;;  %v514_v18 = vmul.f32 %v1056_v16, %v494_v48  ;;  %v515_v19 = vmul.f32 %v1056_v16, %v495_v49 }
 0x22e   :  { %v536_v22 = vmul.f32 %v519_v62, %v512_v17  ;;  %v537_v23 = vmul.f32 %v524_v8, %v513_v1  ;;  %v538_v24 = vmul.f32 %v529_v13, %v514_v18  ;;  %v539_v25 = vmul.f32 %v534_v12, %v515_v19  ;;  %v722_v8 = vpop.permute.xlu1 %721 }
 0x230   :  { %v556_v26 = vadd.f32 %v542_v0, %v536_v22  ;;  %v557_v27 = vadd.f32 %v546_v11, %v537_v23  ;;  %v559_v28 = vadd.f32 %v554_v20, %v539_v25  ;;  %v558_v29 = vadd.f32 %v550_v21, %v538_v24  ;;  %v718_v20 = vpop.permute.xlu0 %717 }
 0x232   :  { %v560_v30 = vmax.f32 %v556_v26, 0.0  ;;  %v561_v31 = vmax.f32 %v557_v27, 0.0  ;;  %v563_v32 = vmax.f32 %v559_v28, 0.0  ;;  %v562_v33 = vmax.f32 %v558_v29, 0.0  ;;  %v726_v17 = vpop.permute.xlu1 %725 }
 0x234   :  { %v1020_v34 = vpack.c.bf16 %v561_v31, %v560_v30  ;;  %v1024_v35 = vpack.c.bf16 %v563_v32, %v562_v33  ;;  %v738_v23 = vpop.permute.xlu0 %737 }
 0x236   :  { %1021 = vmatprep.subr.bf16.mxu1 %v1020_v34  ;;  %v742_v19 = vpop.permute.xlu1 %741 }
 0x237   :  { %1023 = vmatpush3.bf16.msra.mxu1 %v1020_v34 }
 0x238   :  { %1025 = vmatprep.subr.bf16.mxu1 %v1024_v35  ;;  %v746_v25 = vpop.permute.xlu0 %745 }
 0x23a   :  { %v730_v22 = vpop.permute.xlu1 %729 }
 0x23b   :  { %1027 = vmatpush3.bf16.msra.mxu1 %v1024_v35 }
 0x23e   :  { %984 = vmatmul.mubr.msk.f32.vlgmr.msra.gmra.mrb[4].mxu1 %vm584_vm1, %v565_v36  ;;  %v750_v24 = vpop.permute.xlu1 %749  ;;  %v762_v36 = vpop.permute.xlu0 %761 }
 0x23f   :  { %986 = vmatprep.mubr.msk.f32.mxu1 %vm584_vm1, %v566_v37 }
 0x242   :  { %987 = vmatmul.mubr.msk.f32.gmra.mrb[6].mxu1 %vm584_vm1, %v567_v38  ;;  %v766_v35 = vpop.permute.xlu1 %765 }
 0x311   :  { %v985_v5 = vpop.f32.mrb[4].mxu1 }
 0x312   :  { %v669_v41 = vadd.f32 %v985_v5, %v574_v4  ;;  %v663_v42 = vpop.f32.mrb[5].mxu1 }
 0x313   :  { %v664_v43 = vadd.f32 %v663_v42, %v570_v39 }
 0x315   :  { %v682_v44 = vadd.f32 %v669_v41, %v664_v43  ;;  %v988_v45 = vpop.f32.mrb[6].mxu1 }
 0x316   :  { %v673_v46 = vpop.f32.mrb[7].mxu1  ;;  %v679_v47 = vadd.f32 %v988_v45, %v582_v10  ;;  %v770_v45 = vpop.permute.xlu1 %769 }
 0x317   :  { %v674_v9 = vadd.f32 %v673_v46, %v578_v40  ;;  %v774_v46 = vpop.permute.xlu0 %773 }
 0x319   :  { %v683_v48 = vadd.f32 %v682_v44, %v674_v9 }
 0x31b   :  { %v684_v49 = vadd.f32 %v683_v48, %v679_v47 }
 0x31d   :  { %v685_v50 = vrot.slane %v684_v49, 4 }
 0x31f   :  { %v686_v51 = vadd.f32 %v685_v50, %v684_v49 }
 0x321   :  { %v687_v52 = vrot.slane %v686_v51, 2 }
 0x323   :  { %v688_v53 = vadd.f32 %v687_v52, %v686_v51 }
 0x325   :  { %v689_v54 = vrot.slane %v688_v53, 1 }
 0x327   :  { %v690_v55 = vadd.f32 %v689_v54, %v688_v53 }
 0x329   :  { %v691_v56 = vmul.f32 0.03125, %v690_v55  ;;  %v793_v55 = vpop.permute.xlu1 %792 }
 0x32b   :  { %v694_v14 = vsub.f32 %v674_v9, %v691_v56  ;;  %v695_v15 = vsub.f32 %v679_v47, %v691_v56  ;;  %v692_v2 = vsub.f32 %v664_v43, %v691_v56  ;;  %v693_v57 = vsub.f32 %v669_v41, %v691_v56 }
 0x32d   :  { %v696_v58 = vmul.f32 %v692_v2, %v692_v2  ;;  %v697_v59 = vmul.f32 %v693_v57, %v693_v57  ;;  %v698_v60 = vmul.f32 %v694_v14, %v694_v14  ;;  %v699_v62 = vmul.f32 %v695_v15, %v695_v15 }
 0x32f   :  { %v700_v61 = vadd.f32 %v697_v59, %v696_v58 }
 0x331   :  { %v701_v63 = vadd.f32 %v700_v61, %v698_v60 }
 0x333   :  { %v702_v0 = vadd.f32 %v701_v63, %v699_v62 }
 0x335   :  { %v703_v7 = vrot.slane %v702_v0, 4 }
 0x337   :  { %v704_v11 = vadd.f32 %v703_v7, %v702_v0 }
 0x339   :  { %v705_v12 = vrot.slane %v704_v11, 2 }
 0x33b   :  { %v706_v13 = vadd.f32 %v705_v12, %v704_v11 }
 0x33d   :  { %v707_v16 = vrot.slane %v706_v13, 1 }
 0x33f   :  { %v708_v1 = vadd.f32 %v707_v16, %v706_v13 }
 0x341   :  { %v709_v18 = vmul.f32 0.03125, %v708_v1 }
 0x343   :  { %v710_v21 = vadd.f32 1e-05, %v709_v18 }
 0x345   :  { %1057 = vrsqrt.f32 %v710_v21 }
 0x34f   :  { %v1058_v26 = vpop.eup %1057 }
 0x350   :  { %v713_v27 = vmul.f32 %v1058_v26, %v693_v57  ;;  %v714_v28 = vmul.f32 %v1058_v26, %v694_v14  ;;  %v712_v29 = vmul.f32 %v1058_v26, %v692_v2  ;;  %v715_v30 = vmul.f32 %v1058_v26, %v695_v15 }
 0x352   :  { %v733_v31 = vmul.f32 %v722_v8, %v713_v27  ;;  %v734_v32 = vmul.f32 %v726_v17, %v714_v28  ;;  %v732_v33 = vmul.f32 %v718_v20, %v712_v29  ;;  %v735_v34 = vmul.f32 %v730_v22, %v715_v30 }
 0x354   :  { %v753_v37 = vadd.f32 %v742_v19, %v733_v31  ;;  %v752_v38 = vadd.f32 %v738_v23, %v732_v33  ;;  %v755_v39 = vadd.f32 %v750_v24, %v735_v34  ;;  %v754_v4 = vadd.f32 %v746_v25, %v734_v32 }
 0x356   :  { %v757_v5 = vmax.f32 %v753_v37, 0.0  ;;  %v756_v40 = vmax.f32 %v752_v38, 0.0  ;;  %v758_v41 = vmax.f32 %v754_v4, 0.0  ;;  %v759_v42 = vmax.f32 %v755_v39, 0.0 }
 0x358   :  { %v777_v43 = vmul.f32 %v766_v35, %v757_v5  ;;  %v776_v44 = vmul.f32 %v762_v36, %v756_v40  ;;  %v778_v10 = vmul.f32 %v770_v45, %v758_v41  ;;  %v779_v48 = vmul.f32 %v774_v46, %v759_v42 }
 0x35a   :  { %v780_v9 = vadd.f32 %v777_v43, %v776_v44 }
 0x35c   :  { %v781_v47 = vadd.f32 %v780_v9, %v778_v10 }
 0x35e   :  { %v782_v49 = vadd.f32 %v781_v47, %v779_v48 }
 0x360   :  { %v783_v50 = vrot.slane %v782_v49, 4 }
 0x362   :  { %v784_v51 = vadd.f32 %v783_v50, %v782_v49 }
 0x364   :  { %v785_v52 = vrot.slane %v784_v51, 2 }
 0x366   :  { %v786_v53 = vadd.f32 %v785_v52, %v784_v51 }
 0x368   :  { %v787_v54 = vrot.slane %v786_v53, 1 }
 0x36a   :  { %v788_v56 = vadd.f32 %v787_v54, %v786_v53 }
 0x36c   :  { %v795_v14 = vadd.f32 %v793_v55, %v788_v56 }
 0x36e   :  { %v871_v15 = vmul.f32 -1.442695, %v795_v14 }
 0x370   :  { %1059 = vpow2.f32 %v871_v15 }
 0x37a   :  { %v1060_v2 = vpop.eup %1059 }
 0x37b   :  { %v799_v57 = vadd.f32 1.0, %v1060_v2 }
 0x37d   :  { %1061 = vrcp.f32 %v799_v57 }
 0x387   :  { %v1062_v58 = vpop.eup %1061 }
 0x388   :  { %v805_v59 = vrot.slane %v1062_v58, %v36_v6 }
 0x38a   :  { %806 = vst [vmem:[%s1428_s6] sm:$0xff] %v805_v59 }

</bundles_post_ra>
